<compile_context>
chip_gen: v7x
topology: tpu7x:2x2x1
jax: 0.10.0
libtpu: 0.0.40
codegen_flags: <defaults>
</compile_context>

<pallas_src>
import numpy as np
import jax
import jax.numpy as jnp
from jax.experimental import pallas as pl
from jax.experimental.pallas import tpu as pltpu


def _make_qmixture_kernel(num_modalities):
    M = num_modalities

    def kernel(*refs):
        # refs = (wr, wi, xr_0, xi_0, ..., xr_{M-1}, xi_{M-1}, out_r, out_i)
        wr_ref, wi_ref = refs[0], refs[1]
        x_refs = refs[2:2 + 2 * M]
        or_ref, oi_ref = refs[2 + 2 * M], refs[3 + 2 * M]

        wr = wr_ref[...]                      # (TB, M) f32 (real part of weights)
        wi = wi_ref[...]                      # (TB, M) f32 (imag part, zeros if real)

        acc_r = None
        acc_i = None
        for m in range(M):                    # static unroll; M (modalities) is small
            xr = x_refs[2 * m][...]           # (TB, C) real plane of modality m
            xi = x_refs[2 * m + 1][...]       # (TB, C) imag plane of modality m
            wrm = wr[:, m:m + 1]              # (TB, 1) -> lane-broadcast across C
            wim = wi[:, m:m + 1]
            tr = wrm * xr - wim * xi
            ti = wrm * xi + wim * xr
            acc_r = tr if acc_r is None else acc_r + tr
            acc_i = ti if acc_i is None else acc_i + ti
        or_ref[...] = acc_r
        oi_ref[...] = acc_i

    return kernel


class QMixtureC:
    """JAX/Pallas port of models/Quantum.py::QMixtureC."""

    def __init__(self, use_weights=True):
        self.use_weights = use_weights  # kept for API parity (unused, as in torch)

    def __call__(self, inputs):
        if not isinstance(inputs, (list, tuple)):
            raise ValueError('This layer should be called on a list of 2 inputs.')
        if len(inputs) != 2:
            raise ValueError('This layer should be called on a list of 2 inputs.'
                             'Got ' + str(len(inputs)) + ' inputs.')
        in_modalities, weights = inputs

        # Normalize each modality to an array (T, B, E, E); per-time-step lists OK.
        mods = [jnp.stack(list(m), axis=0) if isinstance(m, (list, tuple))
                else jnp.asarray(m) for m in in_modalities]
        M = len(mods)
        T, B = mods[0].shape[0], mods[0].shape[1]
        E = mods[0].shape[-1]
        N = T * B
        C = E * E

        # weights: (B, T, M) -> transpose(0,1) -> (T, B, M) -> (N, M), split re/im.
        w = jnp.swapaxes(jnp.asarray(weights), 0, 1).reshape(N, M)
        if jnp.iscomplexobj(w):
            wr = jnp.real(w).astype(jnp.float32)
            wi = jnp.imag(w).astype(jnp.float32)
        else:
            wr = w.astype(jnp.float32)
            wi = jnp.zeros_like(wr)

        # Real / imag planes of every modality, flattened to (N, E*E).
        planes = []
        for x in mods:
            x2 = x.reshape(N, C)
            planes.append(jnp.real(x2).astype(jnp.float32))
            planes.append(jnp.imag(x2).astype(jnp.float32))

        # Adaptive row-tile size: keep double-buffered working set well under the
        # scoped-VMEM default on every generation (v7x has only 64 MiB total).
        bytes_per_row = (2 * M + 2) * C * 4            # x planes + both outputs
        tb_cap = int((6 << 20) // (2 * bytes_per_row)) # /2 for double buffering
        tb = max(8, (tb_cap // 8) * 8)
        tb = min(512, tb)
        if N <= tb:
            tb = N                                     # single block == full extent
            n_pad = N
        else:
            n_pad = -(-N // tb) * tb
        grid = (n_pad // tb,)

        if n_pad != N:
            pad = n_pad - N
            wr = jnp.pad(wr, ((0, pad), (0, 0)))
            wi = jnp.pad(wi, ((0, pad), (0, 0)))
            planes = [jnp.pad(p, ((0, pad), (0, 0))) for p in planes]

        w_spec = pl.BlockSpec((tb, M), lambda i: (i, 0))
        x_spec = pl.BlockSpec((tb, C), lambda i: (i, 0))
        o_spec = pl.BlockSpec((tb, C), lambda i: (i, 0))

        out_r, out_i = pl.pallas_call(
            _make_qmixture_kernel(M),
            out_shape=(jax.ShapeDtypeStruct((n_pad, C), jnp.float32),
                       jax.ShapeDtypeStruct((n_pad, C), jnp.float32)),
            grid=grid,
            in_specs=[w_spec, w_spec] + [x_spec] * (2 * M),
            out_specs=(o_spec, o_spec),
            compiler_params=pltpu.CompilerParams(
                dimension_semantics=("parallel",)),
        )(wr, wi, *planes)

        out = (out_r[:N] + 1j * out_i[:N]).astype(jnp.complex64)
        out = out.reshape(T, B, E, E)
        # Torch returns a Python list with one (B, E, E) tensor per time step.
        return [out[t] for t in range(T)]


def _reference(in_modalities, weights):
    """Pure-JAX transcription of the torch forward, for validation."""
    mods = [jnp.stack(list(m), axis=0) if isinstance(m, (list, tuple))
            else jnp.asarray(m) for m in in_modalities]
    w = jnp.swapaxes(jnp.asarray(weights), 0, 1)         # (T, B, M)
    T = mods[0].shape[0]
    E = mods[0].shape[-1]
    outs = []
    for t in range(T):
        multimodal_rep = jnp.stack([mod[t] for mod in mods], axis=-1)  # (B, E, E, M)
        wt = w[t].astype(jnp.complex64)[:, None, :, None]              # (B, 1, M, 1)
        wt = jnp.broadcast_to(wt, (wt.shape[0], E, wt.shape[2], 1))    # (B, E, M, 1)
        out = jnp.matmul(multimodal_rep, wt,
                         precision=jax.lax.Precision.HIGHEST)[..., 0]  # (B, E, E)
        outs.append(out)
    return outs


if __name__ == "__main__":
    embed_dim = 16
    batch = 2
    seq = 3
    num_modalities = 2

    key = jax.random.PRNGKey(0)
    keys = jax.random.split(key, 2 * num_modalities + 1)

    # List of M modalities, each (T, B, E, E) complex64 "density matrices".
    in_modalities = []
    for m in range(num_modalities):
        xr = jax.random.normal(keys[2 * m], (seq, batch, embed_dim, embed_dim),
                               dtype=jnp.float32)
        xi = jax.random.normal(keys[2 * m + 1], (seq, batch, embed_dim, embed_dim),
                               dtype=jnp.float32)
        in_modalities.append((xr + 1j * xi).astype(jnp.complex64))

    # Real mixture weights (B, T, M), softmax-normalized over modalities.
    weights = jax.nn.softmax(
        jax.random.normal(keys[-1], (batch, seq, num_modalities), dtype=jnp.float32),
        axis=-1)

    layer = QMixtureC()
    outs = jax.block_until_ready(layer([in_modalities, weights]))
    refs = _reference(in_modalities, weights)
    for o, r in zip(outs, refs):
        np.testing.assert_allclose(np.asarray(o), np.asarray(r), rtol=1e-5, atol=1e-5)

    print("KERNEL_OK")
</pallas_src>

<mosaic_0001>
module attributes {stable_mosaic.version = 11 : i64} {
  func.func @kernel(%arg0: i32, %arg1: memref<6x2xf32, #tpu.memory_space<vmem>>, %arg2: memref<6x2xf32, #tpu.memory_space<vmem>>, %arg3: memref<6x256xf32, #tpu.memory_space<vmem>>, %arg4: memref<6x256xf32, #tpu.memory_space<vmem>>, %arg5: memref<6x256xf32, #tpu.memory_space<vmem>>, %arg6: memref<6x256xf32, #tpu.memory_space<vmem>>, %arg7: memref<6x256xf32, #tpu.memory_space<vmem>>, %arg8: memref<6x256xf32, #tpu.memory_space<vmem>>) attributes {dimension_semantics = [#tpu.dimension_semantics<parallel>], iteration_bounds = array<i64: 1>, scalar_prefetch = 0 : i64, scratch_operands = 0 : i64, tpu.core_type = #tpu.core_type<tc>, window_params = [{transform_indices = @transform_0, window_bounds = array<i64: 6, 2>}, {transform_indices = @transform_1, window_bounds = array<i64: 6, 2>}, {transform_indices = @transform_2, window_bounds = array<i64: 6, 256>}, {transform_indices = @transform_3, window_bounds = array<i64: 6, 256>}, {transform_indices = @transform_4, window_bounds = array<i64: 6, 256>}, {transform_indices = @transform_5, window_bounds = array<i64: 6, 256>}, {transform_indices = @transform_6, window_bounds = array<i64: 6, 256>}, {transform_indices = @transform_7, window_bounds = array<i64: 6, 256>}]} {
    %c0 = arith.constant 0 : index
    %c0_0 = arith.constant 0 : index
    %0 = vector.load %arg1[%c0, %c0_0] : memref<6x2xf32, #tpu.memory_space<vmem>>, vector<6x2xf32>
    %c0_1 = arith.constant 0 : index
    %c0_2 = arith.constant 0 : index
    %1 = vector.load %arg2[%c0_1, %c0_2] : memref<6x2xf32, #tpu.memory_space<vmem>>, vector<6x2xf32>
    %c0_3 = arith.constant 0 : index
    %c0_4 = arith.constant 0 : index
    %2 = vector.load %arg3[%c0_3, %c0_4] : memref<6x256xf32, #tpu.memory_space<vmem>>, vector<6x256xf32>
    %c0_5 = arith.constant 0 : index
    %c0_6 = arith.constant 0 : index
    %3 = vector.load %arg4[%c0_5, %c0_6] : memref<6x256xf32, #tpu.memory_space<vmem>>, vector<6x256xf32>
    %4 = vector.extract_strided_slice %0 {offsets = [0, 0], sizes = [6, 1], strides = [1, 1]} : vector<6x2xf32> to vector<6x1xf32>
    %5 = vector.extract_strided_slice %1 {offsets = [0, 0], sizes = [6, 1], strides = [1, 1]} : vector<6x2xf32> to vector<6x1xf32>
    %6 = vector.broadcast %4 : vector<6x1xf32> to vector<6x256xf32>
    %7 = arith.mulf %6, %2 : vector<6x256xf32>
    %8 = vector.broadcast %5 : vector<6x1xf32> to vector<6x256xf32>
    %9 = arith.mulf %8, %3 : vector<6x256xf32>
    %10 = arith.subf %7, %9 : vector<6x256xf32>
    %11 = vector.broadcast %4 : vector<6x1xf32> to vector<6x256xf32>
    %12 = arith.mulf %11, %3 : vector<6x256xf32>
    %13 = vector.broadcast %5 : vector<6x1xf32> to vector<6x256xf32>
    %14 = arith.mulf %13, %2 : vector<6x256xf32>
    %15 = arith.addf %12, %14 : vector<6x256xf32>
    %c0_7 = arith.constant 0 : index
    %c0_8 = arith.constant 0 : index
    %16 = vector.load %arg5[%c0_7, %c0_8] : memref<6x256xf32, #tpu.memory_space<vmem>>, vector<6x256xf32>
    %c0_9 = arith.constant 0 : index
    %c0_10 = arith.constant 0 : index
    %17 = vector.load %arg6[%c0_9, %c0_10] : memref<6x256xf32, #tpu.memory_space<vmem>>, vector<6x256xf32>
    %18 = vector.extract_strided_slice %0 {offsets = [0, 1], sizes = [6, 1], strides = [1, 1]} : vector<6x2xf32> to vector<6x1xf32>
    %19 = vector.extract_strided_slice %1 {offsets = [0, 1], sizes = [6, 1], strides = [1, 1]} : vector<6x2xf32> to vector<6x1xf32>
    %20 = vector.broadcast %18 : vector<6x1xf32> to vector<6x256xf32>
    %21 = arith.mulf %20, %16 : vector<6x256xf32>
    %22 = vector.broadcast %19 : vector<6x1xf32> to vector<6x256xf32>
    %23 = arith.mulf %22, %17 : vector<6x256xf32>
    %24 = arith.subf %21, %23 : vector<6x256xf32>
    %25 = vector.broadcast %18 : vector<6x1xf32> to vector<6x256xf32>
    %26 = arith.mulf %25, %17 : vector<6x256xf32>
    %27 = vector.broadcast %19 : vector<6x1xf32> to vector<6x256xf32>
    %28 = arith.mulf %27, %16 : vector<6x256xf32>
    %29 = arith.addf %26, %28 : vector<6x256xf32>
    %30 = arith.addf %10, %24 : vector<6x256xf32>
    %31 = arith.addf %15, %29 : vector<6x256xf32>
    %c0_11 = arith.constant 0 : index
    %c0_12 = arith.constant 0 : index
    %32 = vector.load %arg7[%c0_11, %c0_12] : memref<6x256xf32, #tpu.memory_space<vmem>>, vector<6x256xf32>
    tpu.vector_store %arg7[%c0_11, %c0_12], %30 {strides = array<i32>} : memref<6x256xf32, #tpu.memory_space<vmem>>, vector<6x256xf32>,
    %c0_13 = arith.constant 0 : index
    %c0_14 = arith.constant 0 : index
    %33 = vector.load %arg8[%c0_13, %c0_14] : memref<6x256xf32, #tpu.memory_space<vmem>>, vector<6x256xf32>
    tpu.vector_store %arg8[%c0_13, %c0_14], %31 {strides = array<i32>} : memref<6x256xf32, #tpu.memory_space<vmem>>, vector<6x256xf32>,
    return
  }
  func.func @transform_0(%arg0: i32) -> (i32, i32) {
    %c0_i32 = arith.constant 0 : i32
    %c0_i32_0 = arith.constant 0 : i32
    return %arg0, %c0_i32 : i32, i32
  }
  func.func @transform_1(%arg0: i32) -> (i32, i32) {
    %c0_i32 = arith.constant 0 : i32
    %c0_i32_0 = arith.constant 0 : i32
    return %arg0, %c0_i32 : i32, i32
  }
  func.func @transform_2(%arg0: i32) -> (i32, i32) {
    %c0_i32 = arith.constant 0 : i32
    %c0_i32_0 = arith.constant 0 : i32
    return %arg0, %c0_i32 : i32, i32
  }
  func.func @transform_3(%arg0: i32) -> (i32, i32) {
    %c0_i32 = arith.constant 0 : i32
    %c0_i32_0 = arith.constant 0 : i32
    return %arg0, %c0_i32 : i32, i32
  }
  func.func @transform_4(%arg0: i32) -> (i32, i32) {
    %c0_i32 = arith.constant 0 : i32
    %c0_i32_0 = arith.constant 0 : i32
    return %arg0, %c0_i32 : i32, i32
  }
  func.func @transform_5(%arg0: i32) -> (i32, i32) {
    %c0_i32 = arith.constant 0 : i32
    %c0_i32_0 = arith.constant 0 : i32
    return %arg0, %c0_i32 : i32, i32
  }
  func.func @transform_6(%arg0: i32) -> (i32, i32) {
    %c0_i32 = arith.constant 0 : i32
    %c0_i32_0 = arith.constant 0 : i32
    return %arg0, %c0_i32 : i32, i32
  }
  func.func @transform_7(%arg0: i32) -> (i32, i32) {
    %c0_i32 = arith.constant 0 : i32
    %c0_i32_0 = arith.constant 0 : i32
    return %arg0, %c0_i32 : i32, i32
  }
}

</mosaic_0001>

<bundles_post_ra>
// kernel: tpu_custom_call.1
= control target key start
LH: loop header
LB: loop body
LE: loop exit
PB: predicated region body
PF: predicated region fallthrough
CT: control target
= control target key end

     0   :  { %13 = vsyncpa [#allocation3], 0  ;;  %s365_s0 = inlined_call_operand.vmem [shape: f32[6,2], index: 0, kind: input, shape index: {}]   ;;  %s366_s1 = inlined_call_operand.vmem [shape: f32[6,2], index: 1, kind: input, shape index: {}]   ;;  %s367_s2 = inlined_call_operand.vmem [shape: f32[6,256], index: 2, kind: input, shape index: {}]   ;;  %s368_s3 = inlined_call_operand.hbm [shape: f32[6,256], index: 3, kind: input, shape index: {}]   ;;  %s369_s4 = inlined_call_operand.vmem [shape: f32[6,256], index: 4, kind: input, shape index: {}]   ;;  %s370_s5 = inlined_call_operand.hbm [shape: f32[6,256], index: 5, kind: input, shape index: {}]   ;;  %s371_s6 = inlined_call_operand.hbm [shape: f32[6,256], index: 6, kind: output, shape index: {0}]   ;;  %s372_s7 = inlined_call_operand.hbm [shape: f32[6,256], index: 7, kind: output, shape index: {1}]  }
   0x1   :  { %14 = vsyncpa [#allocation6], 0 }
   0x2   :  { %15 = vsyncpa [#allocation4], 0 }
   0x3   :  { %16 = vsyncpa [#allocation9], 0  ;;  %s246_s24 = smov [#allocation2]   ;;  %s247_s26 = smov [#allocation5]  }
   0x4   :  { %s29_s25 = sshll.u32 %s246_s24, 4  ;;  %s41_s27 = sshll.u32 %s247_s26, 4  ;;  %s30_s25 = int_to_ptr.vmem [resolvable:$true] %s29_s25  ;;  %s42_s27 = int_to_ptr.vmem [resolvable:$true] %s41_s27 }
   0x5   :  { %s150_s30 = scalar_lea.hbm %s368_s3, 256 }
   0x6   :  { %p151_p0 = scmp.ne.s32.totalorder %s368_s3, %s150_s30  ;;  %p154_p1 = scmp.lt.u32.totalorder %s150_s30, %s368_s3 }
   0x8   :  { %p156_p2 = pnand %p154_p1, %p151_p0 }
   0xa   :  { %159 = shalt.err (!%p156_p2)
}
   0xb   :  { %s160_s12 = scalar_lea.vmem %s30_s25, 256  ;;  %p165_p4 = scmp.lt.s32.totalorder %s30_s25, %s30_s25 }
   0xc   :  { %p161_p3 = scmp.ne.s32.totalorder %s30_s25, %s160_s12  ;;  %p166_p5 = scmp.lt.s32.totalorder %s160_s12, %s160_s12 }
   0xe   :  { %p167_p6 = por %p166_p5, %p165_p4 }
  0x10   :  { %p168_p7 = pnand %p167_p6, %p161_p3 }
  0x12   :  { %171 = shalt.err (!%p168_p7)
}
  0x13   :  { %32 = dma.hbm_to_vmem [thread:$0]  %s368_s3, 256, %s30_s25, [#allocation3]  }
  0x14   :  { %s172_s17 = scalar_lea.hbm %s370_s5, 256 }
  0x15   :  { %p173_p8 = scmp.ne.s32.totalorder %s370_s5, %s172_s17  ;;  %p176_p9 = scmp.lt.u32.totalorder %s172_s17, %s370_s5 }
  0x17   :  { %p178_p10 = pnand %p176_p9, %p173_p8 }
  0x19   :  { %181 = shalt.err (!%p178_p10)
}
  0x1a   :  { %s182_s22 = scalar_lea.vmem %s42_s27, 256  ;;  %p187_p12 = scmp.lt.s32.totalorder %s42_s27, %s42_s27 }
  0x1b   :  { %p183_p11 = scmp.ne.s32.totalorder %s42_s27, %s182_s22  ;;  %p188_p13 = scmp.lt.s32.totalorder %s182_s22, %s182_s22 }
  0x1d   :  { %p189_p0 = por %p188_p13, %p187_p12 }
  0x1f   :  { %p190_p1 = pnand %p189_p0, %p183_p11 }
  0x21   :  { %193 = shalt.err (!%p190_p1)
}
  0x22   :  { %44 = dma.hbm_to_vmem [thread:$0]  %s370_s5, 256, %s42_s27, [#allocation6]  }
  0x23   :  { %238 = dma.done.wait [#allocation3], 256  }
  0x24   :  { %239 = vsyncadd [#allocation3], 4294967040 }
  0x25   :  { %240 = dma.done.wait [#allocation6], 256  }
  0x26   :  { %241 = vsyncadd [#allocation6], 4294967040  ;;  %v248_v0 = vmov 1   ;;  %v249_v1 = vmov 0   ;;  %v51_v2 = vld [vmem:[%s365_s0] sm:$0x3f] }
  0x27   :  { %148 = vset.pattern.permute.xlu1 %v248_v0  ;;  %147 = vset.pattern.permute.xlu0 %v249_v1  ;;  %v52_v3 = vld [vmem:[%s366_s1] sm:$0x3f]  ;;  %v80_v5 = vld [vmem:[%s369_s4 + $0x8] sm:$0x3f]  ;;  %v81_v8 = vld [vmem:[#allocation5] sm:$0x3f] }
  0x28   :  { %84 = vperm.xlu1 %148, %v51_v2   ;;  %59 = vperm.xlu0 %147, %v51_v2   ;;  %v79_v4 = vld [vmem:[%s369_s4] sm:$0x3f]  ;;  %v54_v11 = vld [vmem:[%s367_s2 + $0x8] sm:$0x3f]  ;;  %v56_v13 = vld [vmem:[#allocation2 + $0x8] sm:$0x3f] }
  0x29   :  { %v82_v9 = vld [vmem:[#allocation5 + $0x8] sm:$0x3f]  ;;  %v55_v12 = vld [vmem:[#allocation2] sm:$0x3f]  ;;  %s251_s10 = smov [#allocation8]  }
  0x2a   :  { %v53_v10 = vld [vmem:[%s367_s2] sm:$0x3f]  ;;  %s250_s2 = smov [#allocation7]   ;;  %s127_s11 = sshll.u32 %s251_s10, 4  ;;  %s334_s11 = int_to_ptr.vmem [resolvable:$true] %s127_s11 }
  0x2b   :  { %s117_s4 = sshll.u32 %s250_s2, 4  ;;  %s118_s4 = int_to_ptr.vmem [resolvable:$true] %s117_s4 }
  0x2c   :  { %90 = vperm.xlu1 %148, %v52_v3   ;;  %66 = vperm.xlu0 %147, %v52_v3   ;;  %s194_s12 = scalar_lea.vmem %s118_s4, 256  ;;  %p199_p3 = scmp.lt.s32.totalorder %s118_s4, %s118_s4 }
  0x2d   :  { %p195_p2 = scmp.ne.s32.totalorder %s118_s4, %s194_s12  ;;  %p200_p4 = scmp.lt.s32.totalorder %s194_s12, %s194_s12 }
  0x2f   :  { %p201_p5 = por %p200_p4, %p199_p3 }
  0x30   :  { %149 = vset.pattern.permute.xlu0 %v248_v0 }
  0x31   :  { %p202_p6 = pnand %p201_p5, %p195_p2 }
  0xa7   :  { %v85_v6 = vpop.permute.xlu1 %84  ;;  %v60_v7 = vpop.permute.xlu0 %59 }
  0xa8   :  { %v87_v14 = vmul.f32 %v85_v6, %v79_v4  ;;  %v88_v15 = vmul.f32 %v85_v6, %v80_v5  ;;  %v97_v16 = vmul.f32 %v85_v6, %v81_v8  ;;  %v98_v17 = vmul.f32 %v85_v6, %v82_v9 }
  0xa9   :  { %v62_v19 = vmul.f32 %v60_v7, %v53_v10  ;;  %v63_v20 = vmul.f32 %v60_v7, %v54_v11  ;;  %v73_v21 = vmul.f32 %v60_v7, %v55_v12  ;;  %v74_v22 = vmul.f32 %v60_v7, %v56_v13 }
  0xab   :  { %v91_v18 = vpop.permute.xlu1 %90  ;;  %v67_v23 = vpop.permute.xlu0 %66 }
  0xac   :  { %v93_v24 = vmul.f32 %v91_v18, %v81_v8  ;;  %v94_v25 = vmul.f32 %v91_v18, %v82_v9  ;;  %v99_v26 = vmul.f32 %v91_v18, %v79_v4  ;;  %v100_v27 = vmul.f32 %v91_v18, %v80_v5 }
  0xad   :  { %v69_v28 = vmul.f32 %v67_v23, %v55_v12  ;;  %v70_v29 = vmul.f32 %v67_v23, %v56_v13  ;;  %v75_v30 = vmul.f32 %v67_v23, %v53_v10  ;;  %v76_v31 = vmul.f32 %v67_v23, %v54_v11 }
  0xae   :  { %v95_v32 = vsub.f32 %v87_v14, %v93_v24  ;;  %v96_v33 = vsub.f32 %v88_v15, %v94_v25  ;;  %v101_v34 = vadd.f32 %v99_v26, %v97_v16  ;;  %v102_v35 = vadd.f32 %v100_v27, %v98_v17 }
  0xaf   :  { %v71_v36 = vsub.f32 %v62_v19, %v69_v28  ;;  %v72_v37 = vsub.f32 %v63_v20, %v70_v29  ;;  %v77_v38 = vadd.f32 %v75_v30, %v73_v21  ;;  %v78_v39 = vadd.f32 %v76_v31, %v74_v22 }
  0xb1   :  { %v103_v40 = vadd.f32 %v95_v32, %v71_v36  ;;  %v104_v41 = vadd.f32 %v96_v33, %v72_v37  ;;  %v105_v42 = vadd.f32 %v101_v34, %v77_v38  ;;  %v106_v43 = vadd.f32 %v102_v35, %v78_v39 }
  0xb3   :  { %107 = vst [vmem:[#allocation7] sm:$0x3f] %v103_v40  ;;  %108 = vst [vmem:[#allocation7 + $0x8] sm:$0x3f] %v104_v41 }
  0xb4   :  { %109 = vst [vmem:[#allocation8] sm:$0x3f] %v105_v42  ;;  %110 = vst [vmem:[#allocation8 + $0x8] sm:$0x3f] %v106_v43 }
  0xb5   :  { %205 = shalt.err (!%p202_p6)
}
  0xb6   :  { %s206_s15 = scalar_lea.hbm %s371_s6, 256 }
  0xb7   :  { %p207_p7 = scmp.ne.s32.totalorder %s371_s6, %s206_s15  ;;  %p210_p8 = scmp.lt.u32.totalorder %s206_s15, %s371_s6 }
  0xb9   :  { %p212_p9 = pnand %p210_p8, %p207_p7 }
  0xbb   :  { %215 = shalt.err (!%p212_p9)
}
  0xbc   :  { %120 = dma.vmem_to_hbm [thread:$0]  %s118_s4, 256, %s371_s6, [#allocation4]  }
  0xbd   :  { %s216_s22 = scalar_lea.vmem %s334_s11, 256  ;;  %p221_p11 = scmp.lt.s32.totalorder %s334_s11, %s334_s11 }
  0xbe   :  { %p217_p10 = scmp.ne.s32.totalorder %s334_s11, %s216_s22  ;;  %p222_p12 = scmp.lt.s32.totalorder %s216_s22, %s216_s22 }
  0xc0   :  { %p223_p13 = por %p222_p12, %p221_p11 }
  0xc2   :  { %p224_p0 = pnand %p223_p13, %p217_p10 }
  0xc4   :  { %227 = shalt.err (!%p224_p0)
}
  0xc5   :  { %s228_s24 = scalar_lea.hbm %s372_s7, 256 }
  0xc6   :  { %p229_p1 = scmp.ne.s32.totalorder %s372_s7, %s228_s24  ;;  %p232_p2 = scmp.lt.u32.totalorder %s228_s24, %s372_s7 }
  0xc8   :  { %p234_p3 = pnand %p232_p2, %p229_p1 }
  0xca   :  { %237 = shalt.err (!%p234_p3)
}
  0xcb   :  { %130 = dma.vmem_to_hbm [thread:$0]  %s334_s11, 256, %s372_s7, [#allocation9]  }
  0xcc   :  { %242 = dma.done.wait [#allocation4], 256  }
  0xcd   :  { %243 = vsyncadd [#allocation4], 4294967040 }
  0xce   :  { %244 = dma.done.wait [#allocation9], 256  }
  0xcf   :  { %245 = vsyncadd [#allocation9], 4294967040 }
  0xd0   :  { %137 = vsyncpa [#allocation3], 1 }
  0xd1   :  { %138 = vsyncpa [#allocation6], 1 }
  0xd2   :  { %139 = vsyncpa [#allocation4], 1 }
  0xd3   :  { %140 = vsyncpa [#allocation9], 1 }

</bundles_post_ra>
